<compile_context>
chip_gen: v7x
topology: tpu7x:2x2x1
jax: 0.10.0
libtpu: 0.0.40
codegen_flags: <defaults>
</compile_context>

<pallas_src>
import functools

import jax
import jax.numpy as jnp
from jax.experimental import pallas as pl
from jax.experimental.pallas import tpu as pltpu

_LANE = 128
_MAX_ROWS_PER_TILE = 512  # (512, 128) f32 tiles: ~1 MiB/step of inputs, x2 buffers
                          # -> comfortably inside the scoped-VMEM default on
                          #    v5e (16 MiB), v6e (32 MiB) and v7x (32 MiB).


def _ce_threshold_kernel(x_ref, tgt_ref, msk_ref, num_ref, den_ref, *, threshold):
    # x_ref: (2, R, 128) logits for both channels of this pixel tile
    # tgt_ref: (R, 128) int32 labels in {0, 1}; msk_ref: (R, 128) float mask
    x0 = x_ref[0, :, :].astype(jnp.float32)
    x1 = x_ref[1, :, :].astype(jnp.float32)
    tgt = tgt_ref[...]
    msk = msk_ref[...].astype(jnp.float32)

    d = x0 - x1                      # logit(class0) - logit(class1)
    is0 = tgt == 0

    # stable 2-class softmax: soft0 = sigmoid(d), reuse e = exp(-|d|)
    e = jnp.exp(-jnp.abs(d))         # in (0, 1]
    inv = 1.0 / (1.0 + e)
    soft0 = jnp.where(d >= 0, inv, e * inv)

    # delta = |one_hot(target)[:, 0] - soft0|
    onehot0 = is0.astype(jnp.float32)
    delta = jnp.abs(onehot0 - soft0)

    # threshold the mask (zeroed entries contribute nothing to num or den)
    mask_z = jnp.where(delta <= threshold, jnp.float32(0.0), msk)

    # per-pixel NLL: -log(soft[target]) = softplus(+-d) (stable, reuses e)
    z = jnp.where(is0, -d, d)
    loss = jnp.maximum(z, 0.0) + jnp.log(1.0 + e)

    # per-tile partial sums (single full-tile XLU reduces)
    num_ref[...] = jnp.sum(loss * mask_z, keepdims=True)   # (1, 1)
    den_ref[...] = jnp.sum(mask_z, keepdims=True)           # (1, 1)


def ce_with_threshold(inp, target, mask, threshold=0.0):
    """inp: (B, 2, H, W) float logits (NCHW); target: (B, H, W) int; mask: (B, H, W)."""
    B, C, H, W = inp.shape
    assert C == 2, "CEwithThreshold is a 2-class loss"
    HW = H * W

    # lane-dense pixel layout: (B, 2, rows, 128) / (B, rows, 128), padded so the
    # tile size divides the row count evenly (padding has mask == 0, so it
    # contributes exactly zero to both partial sums).
    rows = (HW + _LANE - 1) // _LANE
    R = min(rows, _MAX_ROWS_PER_TILE)
    rows_pad = ((rows + R - 1) // R) * R
    HW_pad = rows_pad * _LANE

    x = inp.astype(jnp.float32).reshape(B, 2, HW)
    t = target.astype(jnp.int32).reshape(B, HW)
    m = mask.astype(jnp.float32).reshape(B, HW)
    if HW_pad != HW:
        pad = HW_pad - HW
        x = jnp.pad(x, ((0, 0), (0, 0), (0, pad)))
        t = jnp.pad(t, ((0, 0), (0, pad)))
        m = jnp.pad(m, ((0, 0), (0, pad)))
    x = x.reshape(B, 2, rows_pad, _LANE)
    t = t.reshape(B, rows_pad, _LANE)
    m = m.reshape(B, rows_pad, _LANE)

    grid_t = rows_pad // R
    kernel = functools.partial(_ce_threshold_kernel, threshold=float(threshold))

    num, den = pl.pallas_call(
        kernel,
        grid=(B, grid_t),
        in_specs=[
            pl.BlockSpec((None, 2, R, _LANE), lambda b, ti: (b, 0, ti, 0)),
            pl.BlockSpec((None, R, _LANE), lambda b, ti: (b, ti, 0)),
            pl.BlockSpec((None, R, _LANE), lambda b, ti: (b, ti, 0)),
        ],
        out_specs=[
            pl.BlockSpec((None, None, 1, 1), lambda b, ti: (b, ti, 0, 0)),
            pl.BlockSpec((None, None, 1, 1), lambda b, ti: (b, ti, 0, 0)),
        ],
        out_shape=[
            jax.ShapeDtypeStruct((B, grid_t, 1, 1), jnp.float32),
            jax.ShapeDtypeStruct((B, grid_t, 1, 1), jnp.float32),
        ],
        compiler_params=pltpu.CompilerParams(
            dimension_semantics=("parallel", "parallel")),
    )(x, t, m)

    # tiny cross-tile reduction + final divide in plain JAX.
    # Note: den == 0 (every pixel below threshold) yields NaN, matching PyTorch.
    return jnp.sum(num) / jnp.sum(den)


def _reference(inp, target, mask, threshold):
    # plain-JAX reference mirroring the PyTorch forward
    soft = jax.nn.softmax(inp.astype(jnp.float32), axis=1)
    onehot = jax.nn.one_hot(target, 2, dtype=jnp.float32)           # (B, H, W, 2)
    onehot = jnp.transpose(onehot, (0, 3, 1, 2))                    # (B, 2, H, W)
    delta = jnp.abs(onehot - soft)[:, 0, :, :]
    m = jnp.where(delta <= threshold, 0.0, mask.astype(jnp.float32))
    b, h, w = m.shape
    m = m * b * h * w / jnp.sum(m)
    logsoft = jnp.log(soft)
    loss = -jnp.take_along_axis(logsoft, target[:, None, :, :], axis=1)[:, 0]
    return jnp.mean(loss * m)


if __name__ == "__main__":
    key = jax.random.PRNGKey(0)
    k1, k2, k3 = jax.random.split(key, 3)

    B, C, H, W = 2, 2, 16, 16
    threshold = 0.3

    inp = jax.random.normal(k1, (B, C, H, W), dtype=jnp.float32)           # logits, NCHW
    target = jax.random.randint(k2, (B, H, W), 0, 2, dtype=jnp.int32)      # labels {0,1}
    mask = (jax.random.uniform(k3, (B, H, W)) > 0.25).astype(jnp.float32)  # binary mask

    loss = ce_with_threshold(inp, target, mask, threshold=threshold)
    loss = jax.block_until_ready(loss)

    ref = _reference(inp, target, mask, threshold)
    assert jnp.allclose(loss, ref, rtol=1e-4, atol=1e-5), (loss, ref)

    print("KERNEL_OK")
</pallas_src>

<mosaic_0001>
module attributes {stable_mosaic.version = 11 : i64} {
  func.func @_ce_threshold_kernel(%arg0: i32, %arg1: i32, %arg2: memref<1x2x2x128xf32, #tpu.memory_space<vmem>>, %arg3: memref<1x2x128xi32, #tpu.memory_space<vmem>>, %arg4: memref<1x2x128xf32, #tpu.memory_space<vmem>>, %arg5: memref<1x1x1x1xf32, #tpu.memory_space<vmem>>, %arg6: memref<1x1x1x1xf32, #tpu.memory_space<vmem>>) attributes {dimension_semantics = [#tpu.dimension_semantics<parallel>, #tpu.dimension_semantics<parallel>], iteration_bounds = array<i64: 2, 1>, scalar_prefetch = 0 : i64, scratch_operands = 0 : i64, tpu.core_type = #tpu.core_type<tc>, window_params = [{transform_indices = @transform_0, window_bounds = array<i64: 1, 2, 2, 128>}, {transform_indices = @transform_1, window_bounds = array<i64: 1, 2, 128>}, {transform_indices = @transform_2, window_bounds = array<i64: 1, 2, 128>}, {transform_indices = @transform_3, window_bounds = array<i64: 1, 1, 1, 1>}, {transform_indices = @transform_4, window_bounds = array<i64: 1, 1, 1, 1>}]} {
    %c0 = arith.constant 0 : index
    %c0_0 = arith.constant 0 : index
    %c0_1 = arith.constant 0 : index
    %c0_2 = arith.constant 0 : index
    %0 = vector.load %arg2[%c0, %c0_0, %c0_1, %c0_2] : memref<1x2x2x128xf32, #tpu.memory_space<vmem>>, vector<1x1x2x128xf32>
    %1 = vector.shape_cast %0 : vector<1x1x2x128xf32> to vector<2x128xf32>
    %c0_3 = arith.constant 0 : index
    %c1 = arith.constant 1 : index
    %c0_4 = arith.constant 0 : index
    %c0_5 = arith.constant 0 : index
    %2 = vector.load %arg2[%c0_3, %c1, %c0_4, %c0_5] : memref<1x2x2x128xf32, #tpu.memory_space<vmem>>, vector<1x1x2x128xf32>
    %3 = vector.shape_cast %2 : vector<1x1x2x128xf32> to vector<2x128xf32>
    %c0_6 = arith.constant 0 : index
    %c0_7 = arith.constant 0 : index
    %c0_8 = arith.constant 0 : index
    %4 = vector.load %arg3[%c0_6, %c0_7, %c0_8] : memref<1x2x128xi32, #tpu.memory_space<vmem>>, vector<1x2x128xi32>
    %5 = vector.shape_cast %4 : vector<1x2x128xi32> to vector<2x128xi32>
    %c0_9 = arith.constant 0 : index
    %c0_10 = arith.constant 0 : index
    %c0_11 = arith.constant 0 : index
    %6 = vector.load %arg4[%c0_9, %c0_10, %c0_11] : memref<1x2x128xf32, #tpu.memory_space<vmem>>, vector<1x2x128xf32>
    %7 = vector.shape_cast %6 : vector<1x2x128xf32> to vector<2x128xf32>
    %8 = arith.subf %1, %3 : vector<2x128xf32>
    %c0_i32 = arith.constant 0 : i32
    %9 = vector.broadcast %c0_i32 : i32 to vector<2x128xi32>
    %10 = arith.cmpi eq, %5, %9 : vector<2x128xi32>
    %11 = math.absf %8 : vector<2x128xf32>
    %cst = arith.constant 0.000000e+00 : f32
    %12 = vector.broadcast %cst : f32 to vector<2x128xf32>
    %13 = arith.subf %12, %11 : vector<2x128xf32>
    %14 = math.exp %13 : vector<2x128xf32>
    %cst_12 = arith.constant 1.000000e+00 : f32
    %15 = vector.broadcast %cst_12 : f32 to vector<2x128xf32>
    %16 = arith.addf %15, %14 : vector<2x128xf32>
    %cst_13 = arith.constant 1.000000e+00 : f32
    %17 = vector.broadcast %cst_13 : f32 to vector<2x128xf32>
    %18 = arith.divf %17, %16 : vector<2x128xf32>
    %cst_14 = arith.constant 0.000000e+00 : f32
    %19 = vector.broadcast %cst_14 : f32 to vector<2x128xf32>
    %20 = arith.cmpf oge, %8, %19 : vector<2x128xf32>
    %21 = arith.mulf %14, %18 : vector<2x128xf32>
    %22 = arith.select %20, %18, %21 : vector<2x128xi1>, vector<2x128xf32>
    %23 = arith.extui %10 : vector<2x128xi1> to vector<2x128xi32>
    %24 = arith.sitofp %23 : vector<2x128xi32> to vector<2x128xf32>
    %25 = arith.subf %24, %22 : vector<2x128xf32>
    %26 = math.absf %25 : vector<2x128xf32>
    %cst_15 = arith.constant 3.000000e-01 : f32
    %27 = vector.broadcast %cst_15 : f32 to vector<2x128xf32>
    %28 = arith.cmpf ole, %26, %27 : vector<2x128xf32>
    %cst_16 = arith.constant 0.000000e+00 : f32
    %29 = vector.broadcast %cst_16 : f32 to vector<2x128xf32>
    %30 = arith.select %28, %29, %7 : vector<2x128xi1>, vector<2x128xf32>
    %cst_17 = arith.constant 0.000000e+00 : f32
    %31 = vector.broadcast %cst_17 : f32 to vector<2x128xf32>
    %32 = arith.subf %31, %8 : vector<2x128xf32>
    %33 = arith.select %10, %32, %8 : vector<2x128xi1>, vector<2x128xf32>
    %cst_18 = arith.constant 0.000000e+00 : f32
    %34 = vector.broadcast %cst_18 : f32 to vector<2x128xf32>
    %35 = arith.maximumf %33, %34 : vector<2x128xf32>
    %cst_19 = arith.constant 1.000000e+00 : f32
    %36 = vector.broadcast %cst_19 : f32 to vector<2x128xf32>
    %37 = arith.addf %36, %14 : vector<2x128xf32>
    %38 = math.log %37 : vector<2x128xf32>
    %39 = arith.addf %35, %38 : vector<2x128xf32>
    %40 = arith.mulf %39, %30 : vector<2x128xf32>
    %41 = vector.shape_cast %40 : vector<2x128xf32> to vector<1x2x128xf32>
    %cst_20 = arith.constant dense<0.000000e+00> : vector<1xf32>
    %42 = vector.multi_reduction <add>, %41, %cst_20 [1, 2] : vector<1x2x128xf32> to vector<1xf32>
    %43 = vector.shape_cast %42 : vector<1xf32> to vector<1x1x1xf32>
    %44 = vector.extract %43[0, 0, 0] : f32 from vector<1x1x1xf32>
    %45 = vector.broadcast %44 : f32 to vector<1x1xf32>
    %c0_21 = arith.constant 0 : index
    %c0_22 = arith.constant 0 : index
    %c0_23 = arith.constant 0 : index
    %c0_24 = arith.constant 0 : index
    %46 = vector.load %arg5[%c0_21, %c0_22, %c0_23, %c0_24] : memref<1x1x1x1xf32, #tpu.memory_space<vmem>>, vector<1x1x1x1xf32>
    %47 = vector.shape_cast %46 : vector<1x1x1x1xf32> to vector<1x1xf32>
    %48 = vector.shape_cast %45 : vector<1x1xf32> to vector<1x1x1x1xf32>
    tpu.vector_store %arg5[%c0_21, %c0_22, %c0_23, %c0_24], %48 {strides = array<i32>} : memref<1x1x1x1xf32, #tpu.memory_space<vmem>>, vector<1x1x1x1xf32>,
    %49 = vector.shape_cast %30 : vector<2x128xf32> to vector<1x2x128xf32>
    %cst_25 = arith.constant dense<0.000000e+00> : vector<1xf32>
    %50 = vector.multi_reduction <add>, %49, %cst_25 [1, 2] : vector<1x2x128xf32> to vector<1xf32>
    %51 = vector.shape_cast %50 : vector<1xf32> to vector<1x1x1xf32>
    %52 = vector.extract %51[0, 0, 0] : f32 from vector<1x1x1xf32>
    %53 = vector.broadcast %52 : f32 to vector<1x1xf32>
    %c0_26 = arith.constant 0 : index
    %c0_27 = arith.constant 0 : index
    %c0_28 = arith.constant 0 : index
    %c0_29 = arith.constant 0 : index
    %54 = vector.load %arg6[%c0_26, %c0_27, %c0_28, %c0_29] : memref<1x1x1x1xf32, #tpu.memory_space<vmem>>, vector<1x1x1x1xf32>
    %55 = vector.shape_cast %54 : vector<1x1x1x1xf32> to vector<1x1xf32>
    %56 = vector.shape_cast %53 : vector<1x1xf32> to vector<1x1x1x1xf32>
    tpu.vector_store %arg6[%c0_26, %c0_27, %c0_28, %c0_29], %56 {strides = array<i32>} : memref<1x1x1x1xf32, #tpu.memory_space<vmem>>, vector<1x1x1x1xf32>,
    return
  }
  func.func @transform_0(%arg0: i32, %arg1: i32) -> (i32, i32, i32, i32) {
    %c0_i32 = arith.constant 0 : i32
    %c0_i32_0 = arith.constant 0 : i32
    %c0_i32_1 = arith.constant 0 : i32
    return %arg0, %c0_i32, %arg1, %c0_i32_0 : i32, i32, i32, i32
  }
  func.func @transform_1(%arg0: i32, %arg1: i32) -> (i32, i32, i32) {
    %c0_i32 = arith.constant 0 : i32
    %c0_i32_0 = arith.constant 0 : i32
    return %arg0, %arg1, %c0_i32 : i32, i32, i32
  }
  func.func @transform_2(%arg0: i32, %arg1: i32) -> (i32, i32, i32) {
    %c0_i32 = arith.constant 0 : i32
    %c0_i32_0 = arith.constant 0 : i32
    return %arg0, %arg1, %c0_i32 : i32, i32, i32
  }
  func.func @transform_3(%arg0: i32, %arg1: i32) -> (i32, i32, i32, i32) {
    %c0_i32 = arith.constant 0 : i32
    %c0_i32_0 = arith.constant 0 : i32
    %c0_i32_1 = arith.constant 0 : i32
    return %arg0, %arg1, %c0_i32, %c0_i32_0 : i32, i32, i32, i32
  }
  func.func @transform_4(%arg0: i32, %arg1: i32) -> (i32, i32, i32, i32) {
    %c0_i32 = arith.constant 0 : i32
    %c0_i32_0 = arith.constant 0 : i32
    %c0_i32_1 = arith.constant 0 : i32
    return %arg0, %arg1, %c0_i32, %c0_i32_0 : i32, i32, i32, i32
  }
}

</mosaic_0001>

<bundles_post_ra>
// kernel: tpu_custom_call.1
= control target key start
LH: loop header
LB: loop body
LE: loop exit
PB: predicated region body
PF: predicated region fallthrough
CT: control target
= control target key end

     0   :  { %10 = vsyncpa [#allocation3], 0  ;;  %s943_s0 = inlined_call_operand.hbm [shape: f32[2,2,2,128], index: 0, kind: input, shape index: {}]   ;;  %s944_s1 = inlined_call_operand.hbm [shape: s32[2,2,128], index: 1, kind: input, shape index: {}]   ;;  %s945_s2 = inlined_call_operand.vmem [shape: f32[2,2,128], index: 2, kind: input, shape index: {}]   ;;  %s946_s3 = inlined_call_operand.vmem [shape: f32[2,1,1,1], index: 3, kind: output, shape index: {0}]   ;;  %s947_s4 = inlined_call_operand.vmem [shape: f32[2,1,1,1], index: 4, kind: output, shape index: {1}]  }
   0x1   :  { %12 = vsyncpa [#allocation3 + $0x1], 0 }
   0x2   :  { %13 = vsyncpa [#allocation5], 0 }
   0x3   :  { %15 = vsyncpa [#allocation5 + $0x1], 0  ;;  %s768_s15 = smov 0   ;;  %s770_s16 = smov 0  }
   0x4   :  { %s772_s17 = smov 0   ;;  %s774_s18 = smov 0  }
   0x5   :  { %s776_s19 = smov 0   ;;  %s778_s20 = smov 0  }
   0x6 LB: > { %s531_s21 = sadd.s32 4294967295, %s736_s20   ;;  %s33_s22 = sadd.s32 1, %s732_s19  ;;  %s736_s20 = sphi %s778_s20, %s21_s20   ;;  %s732_s19 = sphi %s776_s19, %s959_s19   ;;  %s728_s18 = sphi %s774_s18, %s958_s18   ;;  %s724_s17 = sphi %s772_s17, %s957_s17   ;;  %s720_s16 = sphi %s770_s16, %s956_s16   ;;  %s716_s15 = sphi %s768_s15, %s955_s15  }
   0x7   : > { %p35_p0 = scmp.ge.s32.totalorder %s33_s22, 2  ;;  %s42_s23 = sadd.s32 1, %s724_s17 }
   0x8   : > { %p49_p1 = scmp.ne.s32.totalorder %s724_s17, %s720_s16  ;;  %p50_p2 = scmp.eq.s32.totalorder %s736_s20, 0 }
   0x9   : > { %s961_s22 = smov (%p35_p0, %s33_s22), 0  ;;  %p55_p4 = scmp.ne.s32.totalorder %s720_s16, %s716_s15 }
   0xa   : > { %p804_p3 = por %p50_p2, %p49_p1  ;;  %s37_s25 = ssub.s32 %s732_s19, %s961_s22 }
   0xb   : > { %p56_p5 = scmp.eq.s32.totalorder %s531_s21, 0  ;;  %p40_p6 = scmp.eq.s32.totalorder %s37_s25, 0 }
   0xc   : > { %p564_p8 = scmp.lt.s32.totalorder %s736_s20, 2  ;;  %s820_s28 = sand.u32 1, %s724_s17  }
   0xd   : > { %p811_p7 = por %p56_p5, %p55_p4  ;;  %s548_s29 = sshll.u32 %s732_s19, 6 }
   0xe   : > { %s817_s27 = scalar_select %p40_p6, %s724_s17, %s42_s23  }
   0xf   : > { %s950_s26 = scalar_select %p811_p7, 1, 0 }
  0x10   : > { %s535_s30 = sshll.u32 %s820_s28, 2  ;;  %s827_s7 = scalar_lea.hbm %s943_s0, %s548_s29 }
  0x11   : > { %s195_s8 = scalar_lea.vmem [#allocation2], %s535_s30  ;;  %p831_p9 = pnand %p564_p8, %p804_p3 }
  0x12   : > { %s203_s9 = sshll.u32 %s195_s8, 4  ;;  %s192_s11 = scalar_lea.sflag [#allocation3], %s820_s28  ;;  %s835_s9 = int_to_ptr.vmem [resolvable:$true] %s203_s9 }
  0x13   : > { %s622_s12 = scalar_lea.hbm %s827_s7, 64  ;;  %p624_p11 = pneg %p831_p9 }
  0x14   : > { %p623_p10 = scmp.ne.s32.totalorder %s827_s7, %s622_s12  ;;  %s627_s15 = scalar_lea.hbm %s943_s0, 128 }
  0x15   : > { %p628_p0 = scmp.lt.u32.totalorder %s827_s7, %s943_s0  ;;  %p629_p1 = scmp.lt.u32.totalorder %s627_s15, %s622_s12 }
  0x16   : > { %p625_p12 = pnand %p624_p11, %p623_p10  ;;  %p631_p3 = scmp.lt.u32.totalorder %s622_s12, %s827_s7 }
  0x17   : > { %p630_p2 = por %p629_p1, %p628_p0 }
  0x18   : > { %p626_p13 = pneg %p625_p12 }
  0x19   : > { %p632_p4 = por %p631_p3, %p630_p2 }
  0x1b   : > { %p633_p5 = pnand %p632_p4, %p626_p13 }
  0x1d   : > { %636 = shalt.err (!%p633_p5)
}
  0x1e   : > { %s637_s24 = scalar_lea.vmem %s835_s9, 64  ;;  %s738_s25 = smov [#allocation2]  }
  0x1f   : > { %p638_p6 = scmp.ne.s32.totalorder %s835_s9, %s637_s24  ;;  %s642_s29 = sshll.u32 %s738_s25, 4  ;;  %s643_s29 = int_to_ptr.vmem [resolvable:$false] %s642_s29 }
  0x20   : > { %s644_s30 = scalar_lea.vmem %s643_s29, 128  ;;  %p645_p12 = scmp.lt.s32.totalorder %s835_s9, %s643_s29 }
  0x21   : > { %p640_p8 = pnand %p638_p6, %p624_p11  ;;  %p646_p0 = scmp.lt.s32.totalorder %s644_s30, %s637_s24 }
  0x23   : > { %p641_p10 = pneg %p640_p8  ;;  %p647_p1 = por %p646_p0, %p645_p12 }
  0x25   : > { %p648_p2 = pnand %p647_p1, %p641_p10 }
  0x27   : > { %651 = shalt.err (!%p648_p2)
}
  0x28   : > { %s739_s5 = smov 32   ;;  %s740_s6 = smov 2  }
  0x29   : > { %560 = dma.hbm_to_vmem [thread:$0]  (!%p831_p9), %s827_s7, 64, %s835_s9, %s192_s11, %s739_s5, %s739_s5, %s740_s6  }
  0x2a   : > { %p540_p13 = scmp.ge.s32.totalorder %s736_s20, 1  ;;  %p240_p3 = scmp.lt.s32.totalorder %s736_s20, 3 }
  0x2b   : > { %s538_s8 = sshll.u32 %s820_s28, 1  ;;  %s539_s13 = sshll.u32 %s732_s19, 5 }
  0x2c   : > { %p868_p4 = pnand %p540_p13, %p240_p3  ;;  %s217_s14 = scalar_lea.vmem [#allocation4], %s538_s8 }
  0x2d   : > { %s225_s15 = sshll.u32 %s217_s14, 4  ;;  %s876_s24 = scalar_lea.hbm %s944_s1, %s539_s13  ;;  %s226_s15 = int_to_ptr.vmem [resolvable:$true] %s225_s15 }
  0x2e   : > { %s952_s12 = scalar_select %p868_p4, 1, 0 }
  0x2f   : > { %s214_s7 = scalar_lea.sflag [#allocation5], %s820_s28  ;;  %s652_s9 = scalar_lea.hbm %s876_s24, 32 }
  0x30   : > { %p653_p5 = scmp.ne.s32.totalorder %s876_s24, %s652_s9  ;;  %s657_s29 = scalar_lea.hbm %s944_s1, 64 }
  0x31   : > { %p658_p10 = scmp.lt.u32.totalorder %s876_s24, %s944_s1  ;;  %p659_p12 = scmp.lt.u32.totalorder %s657_s29, %s652_s9 }
  0x32   : > { %p655_p6 = pnand %p653_p5, %p624_p11  ;;  %p661_p1 = scmp.lt.u32.totalorder %s652_s9, %s876_s24 }
  0x33   : > { %p660_p0 = por %p659_p12, %p658_p10 }
  0x34   : > { %p656_p8 = pneg %p655_p6 }
  0x35   : > { %p662_p2 = por %p661_p1, %p660_p0 }
  0x37   : > { %p663_p13 = pnand %p662_p2, %p656_p8 }
  0x39   : > { %666 = shalt.err (!%p663_p13)
}
  0x3a   : > { %s667_s28 = scalar_lea.vmem %s226_s15, 32  ;;  %s741_s6 = smov [#allocation4]  }
  0x3b   : > { %p668_p3 = scmp.ne.s32.totalorder %s226_s15, %s667_s28  ;;  %s672_s8 = sshll.u32 %s741_s6, 4  ;;  %s673_s8 = int_to_ptr.vmem [resolvable:$false] %s672_s8 }
  0x3c   : > { %s674_s13 = scalar_lea.vmem %s673_s8, 64  ;;  %p675_p7 = scmp.lt.s32.totalorder %s226_s15, %s673_s8 }
  0x3d   : > { %p670_p5 = pnand %p668_p3, %p624_p11  ;;  %p676_p4 = scmp.lt.s32.totalorder %s674_s13, %s667_s28 }
  0x3f   : > { %p671_p6 = pneg %p670_p5  ;;  %p677_p10 = por %p676_p4, %p675_p7 }
  0x41   : > { %p678_p12 = pnand %p677_p10, %p671_p6 }
  0x43   : > { %681 = shalt.err (!%p678_p12)
}
  0x44   : > { %563 = dma.hbm_to_vmem [thread:$0]  (!%p831_p9), %s876_s24, 32, %s226_s15, %s214_s7  }
  0x45   : > { %p953_p8 = scmp.ne.s32.totalorder %s952_s12, 0 }
  0x46   : > { %s246_s14 = sand.u32 (!%p953_p8), 1, %s720_s16   ;;  %p954_p11 = scmp.ne.s32.totalorder (!%p953_p8), %s950_s26, 0 }
  0x47   : > { %244 = sbr.rel (%p953_p8) target bundleno = 337 (0x151), region = 32  ;;  %s541_s21 = sshll.u32 (!%p953_p8), %s246_s14, 2 }
  0x48   : > { %s247_s23 = scalar_lea.sflag (!%p953_p8), [#allocation3], %s246_s14  ;;  %s250_s9 = scalar_lea.vmem (!%p953_p8), [#allocation2], %s541_s21 }
  0x4e   : > { %707 = dma.done.wait (%p954_p11), %s247_s23, 64  }
  0x4f   : > { %709 = vsyncadd (%p954_p11), %s247_s23, 4294967232  ;;  %s542_s11 = sshll.u32 %s246_s14, 1  ;;  %s256_s25 = scalar_lea.sflag [#allocation5], %s246_s14 }
  0x50   : > { %s259_s10 = scalar_lea.vmem [#allocation4], %s542_s11 }
  0x51   : > { %711 = dma.done.wait (%p954_p11), %s256_s25, 32  }
  0x52   : > { %713 = vsyncadd (%p954_p11), %s256_s25, 4294967264  ;;  %v322_v0 = vld [vmem:[%s250_s9] sm:$0x3]  ;;  %v544_v1 = vld [vmem:[%s250_s9 + $0x2] sm:$0x3]  ;;  %p303_p7 = scmp.lt.s32.totalorder %s728_s18, 1 }
  0x53   : > { %v327_v2 = vsub.f32 %v322_v0, %v544_v1  ;;  %v325_v8 = vld [vmem:[%s259_s10] sm:$0x3]  ;;  %v742_v14 = vmov 0.0   ;;  %vm352_vm3 = vcmask 1041408   ;;  %vm364_vm4 = vcmask 0  }
  0x54   : > { %s963_s18 = smov (!%p303_p7, %s728_s18), 1  ;;  %vm328_vm0 = vcmp.eq.s32.totalorder %v325_v8, 0 }
  0x55   : > { %v329_v3 = vand.u32 2147483647, %v327_v2  ;;  %v345_v9 = vsub.f32 0.0, %v327_v2  ;;  %s543_s26 = sshll.u32 %s963_s18, 1  ;;  %vm336_vm1 = vcmp.ge.f32.partialorder %v327_v2, 0.0  ;;  %v545_v15 = vsel %vm328_vm0, 1.0, %v742_v14  ;;  %s315_s30 = scalar_lea.vmem %s946_s3, %s963_s18 }
  0x56   : > { %s309_s24 = scalar_lea.vmem %s945_s2, %s543_s26  ;;  %s321_s8 = scalar_lea.vmem %s947_s4, %s963_s18 }
  0x57   : > { %v330_v4 = vsub.f32 0.0, %v329_v3  ;;  %v346_v10 = vsel %vm328_vm0, %v345_v9, %v327_v2  ;;  %v326_v20 = vld [vmem:[%s309_s24] sm:$0x3] }
  0x58   : > { %v347_v16 = vmax.f32 %v346_v10, 0.0 }
  0x59   : > { %v331_v5 = vmul.f32 1.442695, %v330_v4 }
  0x5b   : > { %616 = vpow2.f32 %v331_v5 }
  0x65   : > { %v617_v6 = vpop.eup %616 }
  0x66   : > { %v333_v7 = vadd.f32 1.0, %v617_v6 }
  0x68   : > { %618 = vrcp.f32 %v333_v7 }
  0x69   : > { %620 = vlog2.f32 %v333_v7 }
  0x72   : > { %v619_v11 = vpop.eup %618 }
  0x73   : > { %v621_v12 = vpop.eup %620  ;;  %v337_v13 = vmul.f32 %v619_v11, %v617_v6 }
  0x74   : > { %v349_v17 = vmul.f32 0.6931472, %v621_v12 }
  0x75   : > { %v338_v18 = vsel %vm336_vm1, %v619_v11, %v337_v13 }
  0x76   : > { %v341_v19 = vsub.f32 %v545_v15, %v338_v18  ;;  %v350_v22 = vadd.f32 %v349_v17, %v347_v16 }
  0x78   : > { %v342_v21 = vand.u32 2147483647, %v341_v19 }
  0x7a   : > { %vm343_vm2 = vcmp.le.f32.partialorder %v342_v21, 0.3 }
  0x7b   : > { %v344_v23 = vsel %vm343_vm2, 0.0, %v326_v20 }
  0x7c   : > { %v351_v24 = vmul.f32 %v350_v22, %v344_v23  ;;  %v366_v26 = vsel %vm352_vm3, %v344_v23, 0.0 }
  0x7e   : > { %v353_v25 = vsel %vm352_vm3, %v351_v24, 0.0 }
  0x7f   : > { %354 = vadd.xlane.f32.xlu0 %v353_v25 }
  0x83   : > { %367 = vadd.xlane.f32.xlu0 %v366_v26 }
 0x10c   : > { %v355_v27 = vpop.xlane.xlu0 %354 }
 0x10d   : > { %v356_v28 = vrot.slane %v355_v27, 4 }
 0x10f   : > { %v357_v29 = vadd.f32 %v356_v28, %v355_v27 }
 0x110   : > { %v368_v30 = vpop.xlane.xlu0 %367 }
 0x111   : > { %v358_v31 = vrot.slane %v357_v29, 2  ;;  %v369_v32 = vrot.slane %v368_v30, 4 }
 0x113   : > { %v370_v33 = vadd.f32 %v369_v32, %v368_v30  ;;  %v359_v34 = vadd.f32 %v358_v31, %v357_v29 }
 0x115   : > { %v371_v35 = vrot.slane %v370_v33, 2  ;;  %v360_v36 = vrot.slane %v359_v34, 1 }
 0x117   : > { %v372_v37 = vadd.f32 %v371_v35, %v370_v33  ;;  %v361_v38 = vadd.f32 %v360_v36, %v359_v34 }
 0x119   : > { %549 = vpush %v361_v38  ;;  %v373_v39 = vrot.slane %v372_v37, 1 }
 0x11b   : > { %v374_v40 = vadd.f32 %v373_v39, %v372_v37 }
 0x11d   : > { %551 = vpush %v374_v40 }
 0x14a   : > { %s550_s5 = spop %549 }
 0x14b   : > { %v363_v41 = vstv %s550_s5 }
 0x14c   : > { %365 = vst.msk [vmem:[%s315_s30] sm:$0x1] %vm364_vm4, %v363_v41 }
 0x14e   : > { %s552_s13 = spop %551 }
 0x14f   : > { %v376_v42 = vstv %s552_s13 }
 0x150   : > { %377 = vst.msk [vmem:[%s321_s8] sm:$0x1] %vm364_vm4, %v376_v42 }
 0x151 PF: > { %s21_s20 = sadd.s32 1, %s736_s20   ;;  %s955_s15 = smov %s720_s16 }
 0x152   : > { %p18_p9 = scmp.ge.s32.totalorder %s21_s20, 4   ;;  %s956_s16 = smov %s724_s17 }
 0x153   : > { %s957_s17 = smov %s817_s27  ;;  %s958_s18 = smov %s732_s19 }
 0x154   : > { %s959_s19 = smov %s961_s22  ;;  %20 = sbr.rel (!%p18_p9) target bundleno = 6 (0x6), region = 101 }
 0x15b   :  { %419 = vsyncpa [#allocation3], 1 }
 0x15c   :  { %421 = vsyncpa [#allocation3 + $0x1], 1 }
 0x15d   :  { %422 = vsyncpa [#allocation5], 1 }
 0x15e   :  { %424 = vsyncpa [#allocation5 + $0x1], 1 }

</bundles_post_ra>
